<compile_context>
chip_gen: v7x
topology: tpu7x:2x2x1
jax: 0.10.0
libtpu: 0.0.40
codegen_flags: <defaults>
</compile_context>

<pallas_src>
import functools

import jax
import jax.numpy as jnp
from jax import lax
from jax.experimental import pallas as pl
from jax.experimental.pallas import tpu as pltpu


# --------------------------------------------------------------------------
# Generation-dependent VMEM limit (review: don't ask for v7x's whole 64 MiB).
# --------------------------------------------------------------------------
_VMEM_LIMIT_BYTES = None


def _vmem_limit_bytes():
    global _VMEM_LIMIT_BYTES
    if _VMEM_LIMIT_BYTES is None:
        try:
            cap = int(pltpu.get_tpu_info().vmem_capacity_bytes)
            _VMEM_LIMIT_BYTES = min((cap * 3) // 4, 96 * 1024 * 1024)
        except Exception:  # pragma: no cover - conservative fallback
            _VMEM_LIMIT_BYTES = 48 * 1024 * 1024
    return _VMEM_LIMIT_BYTES


# --------------------------------------------------------------------------
# One-time probe of pltpu.roll's shift convention (vs. jnp.roll).
# --------------------------------------------------------------------------
_ROLL_LIKE_JNP = None


def _roll_like_jnp():
    """True iff pltpu.roll(x, s, ax) == jnp.roll(x, s, ax)."""
    global _ROLL_LIKE_JNP
    if _ROLL_LIKE_JNP is None:
        def probe_kernel(x_ref, o_ref):
            o_ref[...] = pltpu.roll(x_ref[...], shift=1, axis=1)

        x = lax.broadcasted_iota(jnp.float32, (8, 128), 1)
        out = pl.pallas_call(
            probe_kernel,
            out_shape=jax.ShapeDtypeStruct((8, 128), jnp.float32),
        )(x)
        # jnp.roll(x, 1, axis=1)[0, 0] == 127 ; opposite convention gives 1.
        _ROLL_LIKE_JNP = bool(float(out[0, 0]) > 64.0)
    return _ROLL_LIKE_JNP


# --------------------------------------------------------------------------
# Kernel: one batch element per grid step.
#   x_ref  : (4C, Mp)   bf16   phase-stacked, flattened, lane-padded input
#   w_ref  : (4, C, 4C) bf16   one fused weight matrix per (row/col offset) group
#   b_ref  : (C, 1)     f32    bias column
#   o_ref  : (C, OH*OW) f32    lane-dense output block
#   acc_ref: (C, Mp)    f32    VMEM accumulator
# --------------------------------------------------------------------------
def _make_kernel(oh, ow, c, mp, roll_like_jnp):
    m = oh * ow
    # group g = 2*i0 + j0 ; we need out[:, t] = x[:, t + d_g]
    group_shift = {1: 1, 2: ow + 1, 3: ow + 2}

    def kernel(x_ref, w_ref, b_ref, o_ref, acc_ref):
        # group 0 : taps (kh, kw) in {0,1}^2 -- no spatial offset, K = 4C matmul
        acc_ref[...] = jnp.dot(
            w_ref[0], x_ref[...], preferred_element_type=jnp.float32
        )
        # groups 1..3 : one XLU lane roll + one K = 4C matmul each
        for g in range(1, 4):
            d = group_shift[g]
            s = (mp - d) if roll_like_jnp else d
            shifted = pltpu.roll(x_ref[...], shift=s, axis=1)
            acc_ref[...] += jnp.dot(
                w_ref[g], shifted, preferred_element_type=jnp.float32
            )
        # single final trim: drop the halo column/row, add bias, store lane-dense
        bias = b_ref[...]  # (C, 1) broadcasts along the spatial axis
        for i in range(oh):
            src = i * (ow + 1)
            o_ref[:, i * ow:(i + 1) * ow] = acc_ref[:, src:src + ow] + bias

    return kernel


# --------------------------------------------------------------------------
# Wrapper.
# --------------------------------------------------------------------------
@functools.partial(jax.jit, static_argnames=("roll_like_jnp",))
def _downsample_impl(x_nchw, weight, bias, *, roll_like_jnp):
    n, c, h, w = x_nchw.shape
    oh, ow = (h + 1) // 2, (w + 1) // 2          # PyTorch-compatible (odd dims OK)
    m = oh * ow
    msp = (oh + 1) * (ow + 1)
    mp = max(128, ((msp + 127) // 128) * 128)    # lane-pad the flat spatial axis

    # ---- layout glue (cast to bf16 first so intermediates are 2-byte) ------
    xb = x_nchw.astype(jnp.bfloat16)
    # pad: +1 conv halo on top/left, +1 halo (+1 if odd) on bottom/right
    xp = jnp.pad(xb, ((0, 0), (0, 0),
                      (1, 2 * oh - h + 1), (1, 2 * ow - w + 1)))
    # stride-2 phase split, phases stacked along the channel (contraction) dim
    xp = xp.reshape(n, c, oh + 1, 2, ow + 1, 2)           # (n, ch, ii, pr, jj, pc)
    xp = jnp.transpose(xp, (0, 3, 5, 1, 2, 4))            # (n, pr, pc, ch, ii, jj)
    xflat = xp.reshape(n, 4 * c, msp)                     # row = phase*C + ch
    if mp != msp:
        xflat = jnp.pad(xflat, ((0, 0), (0, 0), (0, mp - msp)))

    # ---- fused group weights: one (C_out, 4C) matrix per (i0, j0) group ----
    wg = jnp.zeros((4, c, 4 * c), dtype=weight.dtype)
    for i0 in (0, 1):
        for j0 in (0, 1):
            g = 2 * i0 + j0
            for pr in (0, 1):
                for pc in (0, 1):
                    kh, kw = 2 * i0 + pr, 2 * j0 + pc
                    if kh > 2 or kw > 2:
                        continue                      # invalid tap -> stays zero
                    p = 2 * pr + pc
                    wg = wg.at[g, :, p * c:(p + 1) * c].set(weight[:, :, kh, kw])
    wg = wg.astype(jnp.bfloat16)
    b_col = bias.astype(jnp.float32).reshape(c, 1)

    kernel = _make_kernel(oh, ow, c, mp, roll_like_jnp)

    out = pl.pallas_call(
        kernel,
        out_shape=jax.ShapeDtypeStruct((n, c, m), jnp.float32),
        grid=(n,),
        in_specs=[
            pl.BlockSpec((None, 4 * c, mp), lambda b: (b, 0, 0)),
            pl.BlockSpec((4, c, 4 * c), lambda b: (0, 0, 0)),   # resident weights
            pl.BlockSpec((c, 1), lambda b: (0, 0)),             # resident bias
        ],
        out_specs=pl.BlockSpec((None, c, m), lambda b: (b, 0, 0)),
        scratch_shapes=[pltpu.VMEM((c, mp), jnp.float32)],
        compiler_params=pltpu.CompilerParams(
            dimension_semantics=("parallel",),
            vmem_limit_bytes=_vmem_limit_bytes(),
        ),
    )(xflat, wg, b_col)

    # already channel-major: only a free reshape, no transpose pass over HBM
    return out.reshape(n, c, oh, ow).astype(x_nchw.dtype)


def downsample_conv(x_nchw, weight, bias):
    """DownSample forward: Conv2d(C, C, k=3, stride=2, pad=1) on (N, C, H, W)."""
    return _downsample_impl(x_nchw, weight, bias, roll_like_jnp=_roll_like_jnp())


# --------------------------------------------------------------------------
if __name__ == "__main__":
    key = jax.random.PRNGKey(0)
    k_x, k_w, k_b = jax.random.split(key, 3)

    N, C, H, W = 2, 4, 16, 16
    x = jax.random.normal(k_x, (N, C, H, W), dtype=jnp.float32)

    # Deterministic parameter init (shapes of nn.Conv2d(C, C, 3, 2, 1)).
    fan_in = C * 3 * 3
    bound = 1.0 / (fan_in ** 0.5)
    weight = jax.random.uniform(k_w, (C, C, 3, 3), minval=-bound, maxval=bound,
                                dtype=jnp.float32)
    bias = jax.random.uniform(k_b, (C,), minval=-bound, maxval=bound,
                              dtype=jnp.float32)

    out = jax.block_until_ready(downsample_conv(x, weight, bias))

    # Reference with the same bf16 operand precision + f32 accumulation.
    ref = lax.conv_general_dilated(
        x.astype(jnp.bfloat16), weight.astype(jnp.bfloat16),
        window_strides=(2, 2), padding=((1, 1), (1, 1)),
        dimension_numbers=("NCHW", "OIHW", "NCHW"),
        preferred_element_type=jnp.float32,
    ) + bias.reshape(1, C, 1, 1)

    assert out.shape == (N, C, H // 2, W // 2), out.shape
    err = float(jnp.max(jnp.abs(out - ref)))
    assert jnp.allclose(out, ref, atol=2e-3, rtol=2e-3), (
        f"mismatch vs reference, max|err|={err}")
    print("KERNEL_OK")
</pallas_src>

<mosaic_0001>
module attributes {stable_mosaic.version = 11 : i64} {
  func.func @probe_kernel(%arg0: memref<8x128xf32, #tpu.memory_space<vmem>>, %arg1: memref<8x128xf32, #tpu.memory_space<vmem>>) attributes {dimension_semantics = [], scalar_prefetch = 0 : i64, scratch_operands = 0 : i64, tpu.core_type = #tpu.core_type<tc>} {
    %c0 = arith.constant 0 : index
    %c0_0 = arith.constant 0 : index
    %0 = vector.load %arg0[%c0, %c0_0] : memref<8x128xf32, #tpu.memory_space<vmem>>, vector<8x128xf32>
    %c1_i32 = arith.constant 1 : i32
    %1 = tpu.dynamic_rotate %0 by %c1_i32 dim 1 : vector<8x128xf32>, i32 -> vector<8x128xf32>
    %c0_1 = arith.constant 0 : index
    %c0_2 = arith.constant 0 : index
    %2 = vector.load %arg1[%c0_1, %c0_2] : memref<8x128xf32, #tpu.memory_space<vmem>>, vector<8x128xf32>
    tpu.vector_store %arg1[%c0_1, %c0_2], %1 {strides = array<i32>} : memref<8x128xf32, #tpu.memory_space<vmem>>, vector<8x128xf32>,
    return
  }
}

</mosaic_0001>

<bundles_post_ra>
// kernel: tpu_custom_call.1
= control target key start
LH: loop header
LB: loop body
LE: loop exit
PB: predicated region body
PF: predicated region fallthrough
CT: control target
= control target key end

     0   :  { %6 = vsyncpa [#allocation3], 0  ;;  %s128_s0 = inlined_call_operand.hbm [shape: f32[8,128], index: 0, kind: input, shape index: {}]   ;;  %s129_s1 = inlined_call_operand.hbm [shape: f32[8,128], index: 1, kind: output, shape index: {}]  }
   0x1   :  { %7 = vsyncpa [#allocation4], 0  ;;  %s91_s6 = smov [#allocation2]   ;;  %s43_s10 = scalar_lea.hbm %s128_s0, 128 }
   0x2   :  { %s14_s7 = sshll.u32 %s91_s6, 4  ;;  %p44_p0 = scmp.ne.s32.totalorder %s128_s0, %s43_s10  ;;  %s15_s7 = int_to_ptr.vmem [resolvable:$true] %s14_s7 }
   0x3   :  { %p47_p1 = scmp.lt.u32.totalorder %s43_s10, %s128_s0 }
   0x5   :  { %p49_p2 = pnand %p47_p1, %p44_p0 }
   0x7   :  { %52 = shalt.err (!%p49_p2)
}
   0x8   :  { %s53_s15 = scalar_lea.vmem %s15_s7, 128  ;;  %p58_p4 = scmp.lt.s32.totalorder %s15_s7, %s15_s7 }
   0x9   :  { %p54_p3 = scmp.ne.s32.totalorder %s15_s7, %s53_s15  ;;  %p59_p5 = scmp.lt.s32.totalorder %s53_s15, %s53_s15 }
   0xb   :  { %p60_p6 = por %p59_p5, %p58_p4 }
   0xd   :  { %p61_p7 = pnand %p60_p6, %p54_p3 }
   0xf   :  { %64 = shalt.err (!%p61_p7)
}
  0x10   :  { %17 = dma.hbm_to_vmem [thread:$0]  %s128_s0, 128, %s15_s7, [#allocation3]  }
  0x11   :  { %87 = dma.done.wait [#allocation3], 128  }
  0x12   :  { %88 = vsyncadd [#allocation3], 4294967168  ;;  %v21_v0 = vld [vmem:[#allocation2] sm:$0xff]  ;;  %s92_s18 = smov 1   ;;  %s93_s19 = smov [#allocation5]  }
  0x13   :  { %22 = vrot.lane.b32.xlu0 %v21_v0, %s92_s18  ;;  %s31_s20 = sshll.u32 %s93_s19, 4  ;;  %s32_s20 = int_to_ptr.vmem [resolvable:$true] %s31_s20 }
  0x14   :  { %s65_s21 = scalar_lea.vmem %s32_s20, 128  ;;  %p70_p9 = scmp.lt.s32.totalorder %s32_s20, %s32_s20 }
  0x15   :  { %p66_p8 = scmp.ne.s32.totalorder %s32_s20, %s65_s21  ;;  %p71_p10 = scmp.lt.s32.totalorder %s65_s21, %s65_s21 }
  0x17   :  { %p72_p11 = por %p71_p10, %p70_p9 }
  0x19   :  { %p73_p12 = pnand %p72_p11, %p66_p8 }
  0x85   :  { %v23_v1 = vpop.permute.xlu0 %22 }
  0x86   :  { %24 = vst [vmem:[#allocation5] sm:$0xff] %v23_v1 }
  0x87   :  { %76 = shalt.err (!%p73_p12)
}
  0x88   :  { %s77_s0 = scalar_lea.hbm %s129_s1, 128 }
  0x89   :  { %p78_p13 = scmp.ne.s32.totalorder %s129_s1, %s77_s0  ;;  %p81_p0 = scmp.lt.u32.totalorder %s77_s0, %s129_s1 }
  0x8b   :  { %p83_p1 = pnand %p81_p0, %p78_p13 }
  0x8d   :  { %86 = shalt.err (!%p83_p1)
}
  0x8e   :  { %34 = dma.vmem_to_hbm [thread:$0]  %s32_s20, 128, %s129_s1, [#allocation4]  }
  0x8f   :  { %89 = dma.done.wait [#allocation4], 128  }
  0x90   :  { %90 = vsyncadd [#allocation4], 4294967168 }
  0x91   :  { %38 = vsyncpa [#allocation3], 1 }
  0x92   :  { %39 = vsyncpa [#allocation4], 1 }

</bundles_post_ra>
